<compile_context>
chip_gen: v5e
topology: v5e:2x2
jax: 0.10.0
libtpu: 0.0.40
codegen_flags: <defaults>
</compile_context>

<pallas_src>
import functools
import math

import jax
import jax.numpy as jnp
from jax import lax
from jax.experimental import pallas as pl
from jax.experimental.pallas import tpu as pltpu


def _cdiv(a, b):
    return (a + b - 1) // b


def _round_up(a, b):
    return _cdiv(a, b) * b


def _rmsnorm_kernel(x_ref, g_ref, o_ref, *, dim, pack):
    # x_ref: (tile_rows, pack*dim) VMEM — each physical row holds `pack` logical
    #        rows of width `dim`, packed along the lane axis (lane-dense when dim<128).
    # g_ref: (1, pack*dim)         VMEM — gamma tiled `pack` times, resident.
    # o_ref: (tile_rows, pack*dim) VMEM
    x = x_ref[...].astype(jnp.float32)
    g = g_ref[...].astype(jnp.float32)
    inv_dim = jnp.float32(1.0 / dim)
    rows = x.shape[0]

    if pack == 1:
        # Per-row mean square; rsqrt(mean_sq) == sqrt(dim)/||x||, so the module's
        # gamma/scale = gamma*sqrt(dim) factor is already folded in.
        msq = jnp.sum(x * x, axis=-1, keepdims=True) * inv_dim        # (rows, 1)
        inv = lax.rsqrt(msq)                                          # EUP
    else:
        sq = x * x                                                    # one full-width pass
        pieces = []
        for j in range(pack):                                         # static, pack <= 16
            seg = sq[:, j * dim:(j + 1) * dim]                        # (rows, dim)
            msq = jnp.sum(seg, axis=-1, keepdims=True) * inv_dim      # (rows, 1)
            pieces.append(jnp.broadcast_to(lax.rsqrt(msq), (rows, dim)))
        inv = jnp.concatenate(pieces, axis=-1)                        # (rows, pack*dim)

    # NOTE: like the PyTorch module there is no eps — an all-zero row yields NaN,
    # which exactly matches the reference semantics.
    o_ref[...] = (x * inv * g).astype(o_ref.dtype)


def rmsnorm_pallas(x, gamma):
    """x: (..., dim), gamma: (dim,). Returns same shape/dtype as x."""
    orig_shape = x.shape
    dim = orig_shape[-1]
    rows = math.prod(orig_shape[:-1]) if len(orig_shape) > 1 else 1
    if rows == 0:
        return x
    x2 = x.reshape(rows, dim)

    # Lane packing: if dim < 128 and divides 128, pack several logical rows into
    # one 128-wide physical row so every load / multiply / store is lane-dense.
    pack = 128 // dim if (dim < 128 and 128 % dim == 0) else 1
    width = pack * dim
    rows_packed = _cdiv(rows, pack)

    # Sublane multiple for the block's second-minor dim (8 f32 / 16 bf16 / 32 int8).
    itemsize = x.dtype.itemsize
    sub = {4: 8, 2: 16, 1: 32}.get(itemsize, 8)

    # Row tile from a conservative VMEM budget:
    #   ~ double-buffered input + double-buffered output + f32 temporaries ~= 6 f32 tiles.
    # 12 MiB keeps us well inside every chip's scoped VMEM (32 MiB limit set below).
    vmem_budget = 12 * 1024 * 1024
    tile_rows = vmem_budget // (6 * width * 4)
    tile_rows = max(sub, min(4096, (tile_rows // sub) * sub))
    tile_rows = min(tile_rows, _round_up(rows_packed, sub))
    # Give the two TensorCores at least two grid steps when there is enough work.
    if _cdiv(rows_packed, tile_rows) == 1 and rows_packed > 2 * sub:
        tile_rows = _round_up(_cdiv(rows_packed, 2), sub)

    grid_rows = _cdiv(rows_packed, tile_rows)
    padded_rows = grid_rows * tile_rows * pack

    # Pad ragged row counts with ones (finite norms; padded rows get sliced off).
    if padded_rows != rows:
        x2 = jnp.pad(x2, ((0, padded_rows - rows), (0, 0)), constant_values=1.0)
    x_packed = x2.reshape(grid_rows * tile_rows, width)   # contiguous -> free reshape
    g_packed = jnp.tile(gamma.reshape(1, dim), (1, pack))

    kernel = functools.partial(_rmsnorm_kernel, dim=dim, pack=pack)

    cost = pl.CostEstimate(
        flops=4 * rows * dim,
        transcendentals=rows,
        bytes_accessed=2 * rows * dim * itemsize + dim * gamma.dtype.itemsize,
    )

    out_packed = pl.pallas_call(
        kernel,
        out_shape=jax.ShapeDtypeStruct((grid_rows * tile_rows, width), x.dtype),
        grid_spec=pltpu.PrefetchScalarGridSpec(
            num_scalar_prefetch=0,
            grid=(grid_rows,),
            in_specs=[
                pl.BlockSpec((tile_rows, width), lambda i: (i, 0)),
                pl.BlockSpec((1, width), lambda i: (0, 0)),   # gamma stays resident
            ],
            out_specs=pl.BlockSpec((tile_rows, width), lambda i: (i, 0)),
        ),
        compiler_params=pltpu.CompilerParams(
            dimension_semantics=("parallel",),
            vmem_limit_bytes=32 * 1024 * 1024,
        ),
        cost_estimate=cost,
    )(x_packed, g_packed)

    out = out_packed.reshape(padded_rows, dim)[:rows]
    return out.reshape(orig_shape)


def rmsnorm_ref(x, gamma):
    # Pure-JAX reference mirroring the PyTorch module exactly.
    dim = x.shape[-1]
    scale = dim ** (-0.5)
    norm = jnp.sqrt(jnp.sum(jnp.square(x), axis=-1, keepdims=True))
    return (gamma / scale) * (x / norm)


if __name__ == "__main__":
    key = jax.random.PRNGKey(0)
    batch, seq, dim = 2, 8, 32

    x = jax.random.normal(key, (batch, seq, dim), dtype=jnp.float32)
    # Deterministic parameter init, matching nn.Parameter(torch.ones(dim)).
    gamma = jnp.ones((dim,), dtype=jnp.float32)

    out = rmsnorm_pallas(x, gamma)
    out = jax.block_until_ready(out)

    ref = rmsnorm_ref(x, gamma)
    assert out.shape == x.shape and out.dtype == x.dtype
    assert jnp.allclose(out, ref, atol=1e-4, rtol=1e-4), "mismatch vs reference (packed path)"

    # Extra coverage: ragged row count + dim >= 128 (unpacked path).
    k2 = jax.random.PRNGKey(1)
    x_big = jax.random.normal(k2, (2, 7, 256), dtype=jnp.float32)
    g_big = jnp.ones((256,), dtype=jnp.float32)
    out_big = jax.block_until_ready(rmsnorm_pallas(x_big, g_big))
    assert jnp.allclose(out_big, rmsnorm_ref(x_big, g_big), atol=1e-4, rtol=1e-4), \
        "mismatch vs reference (unpacked path)"

    # Extra coverage: multi-step grid (exercises pipelining + megacore split).
    k3 = jax.random.PRNGKey(2)
    x_multi = jax.random.normal(k3, (4, 128, 512), dtype=jnp.float32)
    g_multi = jax.random.normal(jax.random.PRNGKey(3), (512,), dtype=jnp.float32)
    out_multi = jax.block_until_ready(rmsnorm_pallas(x_multi, g_multi))
    assert jnp.allclose(out_multi, rmsnorm_ref(x_multi, g_multi), atol=1e-4, rtol=1e-4), \
        "mismatch vs reference (multi-step grid)"

    print("KERNEL_OK")
</pallas_src>

<mosaic_0001>
module attributes {stable_mosaic.version = 11 : i64} {
  func.func @_rmsnorm_kernel(%arg0: i32, %arg1: memref<8x128xf32, #tpu.memory_space<vmem>>, %arg2: memref<1x128xf32, #tpu.memory_space<vmem>>, %arg3: memref<8x128xf32, #tpu.memory_space<vmem>>) attributes {dimension_semantics = [#tpu.dimension_semantics<parallel>], iteration_bounds = array<i64: 1>, scalar_prefetch = 0 : i64, scratch_operands = 0 : i64, tpu.core_type = #tpu.core_type<tc>, window_params = [{transform_indices = @transform_0, window_bounds = array<i64: 8, 128>}, {pipeline_mode = #tpu.pipeline_mode<synchronous>, transform_indices = @transform_1, window_bounds = array<i64: 1, 128>}, {transform_indices = @transform_2, window_bounds = array<i64: 8, 128>}]} {
    %c0 = arith.constant 0 : index
    %c0_0 = arith.constant 0 : index
    %0 = vector.load %arg1[%c0, %c0_0] : memref<8x128xf32, #tpu.memory_space<vmem>>, vector<8x128xf32>
    %c0_1 = arith.constant 0 : index
    %c0_2 = arith.constant 0 : index
    %1 = vector.load %arg2[%c0_1, %c0_2] : memref<1x128xf32, #tpu.memory_space<vmem>>, vector<1x128xf32>
    %2 = arith.mulf %0, %0 : vector<8x128xf32>
    %3 = vector.extract_strided_slice %2 {offsets = [0, 0], sizes = [8, 32], strides = [1, 1]} : vector<8x128xf32> to vector<8x32xf32>
    %cst = arith.constant dense<0.000000e+00> : vector<8xf32>
    %4 = vector.multi_reduction <add>, %3, %cst [1] : vector<8x32xf32> to vector<8xf32>
    %5 = vector.shape_cast %4 : vector<8xf32> to vector<8x1xf32>
    %cst_3 = arith.constant 3.125000e-02 : f32
    %6 = vector.broadcast %cst_3 : f32 to vector<8x1xf32>
    %7 = arith.mulf %5, %6 : vector<8x1xf32>
    %8 = math.rsqrt %7 : vector<8x1xf32>
    %9 = vector.shape_cast %8 : vector<8x1xf32> to vector<8x1xf32>
    %10 = vector.broadcast %9 : vector<8x1xf32> to vector<8x32xf32>
    %11 = vector.extract_strided_slice %2 {offsets = [0, 32], sizes = [8, 32], strides = [1, 1]} : vector<8x128xf32> to vector<8x32xf32>
    %cst_4 = arith.constant dense<0.000000e+00> : vector<8xf32>
    %12 = vector.multi_reduction <add>, %11, %cst_4 [1] : vector<8x32xf32> to vector<8xf32>
    %13 = vector.shape_cast %12 : vector<8xf32> to vector<8x1xf32>
    %cst_5 = arith.constant 3.125000e-02 : f32
    %14 = vector.broadcast %cst_5 : f32 to vector<8x1xf32>
    %15 = arith.mulf %13, %14 : vector<8x1xf32>
    %16 = math.rsqrt %15 : vector<8x1xf32>
    %17 = vector.shape_cast %16 : vector<8x1xf32> to vector<8x1xf32>
    %18 = vector.broadcast %17 : vector<8x1xf32> to vector<8x32xf32>
    %19 = vector.extract_strided_slice %2 {offsets = [0, 64], sizes = [8, 32], strides = [1, 1]} : vector<8x128xf32> to vector<8x32xf32>
    %cst_6 = arith.constant dense<0.000000e+00> : vector<8xf32>
    %20 = vector.multi_reduction <add>, %19, %cst_6 [1] : vector<8x32xf32> to vector<8xf32>
    %21 = vector.shape_cast %20 : vector<8xf32> to vector<8x1xf32>
    %cst_7 = arith.constant 3.125000e-02 : f32
    %22 = vector.broadcast %cst_7 : f32 to vector<8x1xf32>
    %23 = arith.mulf %21, %22 : vector<8x1xf32>
    %24 = math.rsqrt %23 : vector<8x1xf32>
    %25 = vector.shape_cast %24 : vector<8x1xf32> to vector<8x1xf32>
    %26 = vector.broadcast %25 : vector<8x1xf32> to vector<8x32xf32>
    %27 = vector.extract_strided_slice %2 {offsets = [0, 96], sizes = [8, 32], strides = [1, 1]} : vector<8x128xf32> to vector<8x32xf32>
    %cst_8 = arith.constant dense<0.000000e+00> : vector<8xf32>
    %28 = vector.multi_reduction <add>, %27, %cst_8 [1] : vector<8x32xf32> to vector<8xf32>
    %29 = vector.shape_cast %28 : vector<8xf32> to vector<8x1xf32>
    %cst_9 = arith.constant 3.125000e-02 : f32
    %30 = vector.broadcast %cst_9 : f32 to vector<8x1xf32>
    %31 = arith.mulf %29, %30 : vector<8x1xf32>
    %32 = math.rsqrt %31 : vector<8x1xf32>
    %33 = vector.shape_cast %32 : vector<8x1xf32> to vector<8x1xf32>
    %34 = vector.broadcast %33 : vector<8x1xf32> to vector<8x32xf32>
    %35 = tpu.concatenate %10, %18, %26, %34 in 1 : vector<8x32xf32>, vector<8x32xf32>, vector<8x32xf32>, vector<8x32xf32> -> vector<8x128xf32>
    %36 = arith.mulf %0, %35 : vector<8x128xf32>
    %37 = vector.broadcast %1 : vector<1x128xf32> to vector<8x128xf32>
    %38 = arith.mulf %36, %37 : vector<8x128xf32>
    %c0_10 = arith.constant 0 : index
    %c0_11 = arith.constant 0 : index
    %39 = vector.load %arg3[%c0_10, %c0_11] : memref<8x128xf32, #tpu.memory_space<vmem>>, vector<8x128xf32>
    tpu.vector_store %arg3[%c0_10, %c0_11], %38 {strides = array<i32>} : memref<8x128xf32, #tpu.memory_space<vmem>>, vector<8x128xf32>,
    return
  }
  func.func @transform_0(%arg0: i32) -> (i32, i32) {
    %c0_i32 = arith.constant 0 : i32
    %c0_i32_0 = arith.constant 0 : i32
    return %arg0, %c0_i32 : i32, i32
  }
  func.func @transform_1(%arg0: i32) -> (i32, i32) {
    %c0_i32 = arith.constant 0 : i32
    %c0_i32_0 = arith.constant 0 : i32
    %c0_i32_1 = arith.constant 0 : i32
    return %c0_i32, %c0_i32_0 : i32, i32
  }
  func.func @transform_2(%arg0: i32) -> (i32, i32) {
    %c0_i32 = arith.constant 0 : i32
    %c0_i32_0 = arith.constant 0 : i32
    return %arg0, %c0_i32 : i32, i32
  }
}

</mosaic_0001>

<bundles_post_ra>
// kernel: tpu_custom_call.1
= control target key start
LH: loop header
LB: loop body
LE: loop exit
PB: predicated region body
PF: predicated region fallthrough
CT: control target
= control target key end

     0   :  { %7 = vsyncpa [#allocation3], 0  ;;  %s278_s0 = inlined_call_operand.hbm [shape: f32[8,128], index: 0, kind: input, shape index: {}]   ;;  %s279_s1 = inlined_call_operand.hbm [shape: f32[1,128], index: 1, kind: input, shape index: {}]   ;;  %s280_s2 = inlined_call_operand.hbm [shape: f32[8,128], index: 2, kind: output, shape index: {}]  }
   0x1   :  { %8 = vsyncpa [#allocation6], 0 }
   0x2   :  { %9 = vsyncpa [#allocation4], 0  ;;  %s15_s11 = sshll.u32 %s278_s0, 4  ;;  %s232_s12 = smov [#allocation2]   ;;  %s16_s11 = int_to_ptr.hbm [resolvable:$true] %s15_s11 }
   0x3   :  { %s17_s13 = sshll.u32 %s232_s12, 4  ;;  %s26_s16 = sshll.u32 %s279_s1, 4  ;;  %s18_s13 = int_to_ptr.vmem [resolvable:$true] %s17_s13  ;;  %s27_s16 = int_to_ptr.hbm [resolvable:$true] %s26_s16 }
   0x4   :  { %20 = dma.hbm_to_vmem [thread:$0]  %s16_s11, 128, %s18_s13, [#allocation3]  }
   0x5   :  { %s233_s17 = smov [#allocation5]  }
   0x6   :  { %s28_s18 = sshll.u32 %s233_s17, 4  ;;  %s29_s18 = int_to_ptr.vmem [resolvable:$true] %s28_s18 }
   0x7   :  { %31 = dma.hbm_to_vmem [thread:$0]  %s27_s16, 16, %s29_s18, [#allocation6]  }
   0x8   :  { %226 = dma.done.wait [#allocation3], 128  }
   0x9   :  { %227 = vsyncadd [#allocation3], 4294967168 }
   0xa   :  { %228 = dma.done.wait [#allocation6], 16  }
   0xb   :  { %229 = vsyncadd [#allocation6], 4294967280  ;;  %v259_v0 = vld [vmem:[#allocation2] sm:$0xff]  ;;  %s234_s0 = smov 32   ;;  %s235_s19 = smov 96   ;;  %vm43_vm0 = vcmask 261120  }
   0xc   :  { %v42_v1 = vmul.f32 %v259_v0, %v259_v0  ;;  %s236_s1 = smov 64   ;;  %vm111_vm10 = vcmask 523264   ;;  %vm113_vm13 = vcmask 785408   ;;  %v145_v48 = vld [vmem:[#allocation5] ss:$0 sm:$0xff]  ;;  %s237_s20 = smov [#allocation7]  }
   0xd   :  { %s126_s21 = sshll.u32 %s237_s20, 4  ;;  %s128_s24 = sshll.u32 %s280_s2, 4  ;;  %s127_s21 = int_to_ptr.vmem [resolvable:$true] %s126_s21  ;;  %s129_s24 = int_to_ptr.hbm [resolvable:$true] %s128_s24 }
   0xe   :  { %93 = vrot.lane.b32.xlu1 %v42_v1, %s234_s0  ;;  %59 = vrot.lane.b32.xlu0 %v42_v1, %s235_s19  ;;  %v44_v2 = vsel %vm43_vm0, %v42_v1, 0.0 }
  0x16   :  { %76 = vrot.lane.b32.xlu0 %v42_v1, %s236_s1 }
  0x38   :  { %45 = vadd.xlane.f32.xlu1 %v44_v2 }
  0x80   :  { %v94_v3 = vpop.permute.xlu1 %93  ;;  %v60_v4 = vpop.permute.xlu0 %59 }
  0x81   :  { %v96_v5 = vsel %vm43_vm0, %v94_v3, 0.0  ;;  %v62_v6 = vsel %vm43_vm0, %v60_v4, 0.0 }
  0x82   :  { %97 = vadd.xlane.f32.xlu0 %v96_v5  ;;  %63 = vadd.xlane.f32.xlu2 %v62_v6 }
  0x88   :  { %v77_v7 = vpop.permute.xlu0 %76 }
  0x89   :  { %v79_v8 = vsel %vm43_vm0, %v77_v7, 0.0 }
  0x8a   :  { %80 = vadd.xlane.f32.xlu2 %v79_v8 }
  0xab   :  { %v46_v9 = vpop.xlane.xlu1 %45 }
  0xac   :  { %v47_v10 = vmul.f32 0.03125, %v46_v9 }
  0xae   :  { %146 = vrsqrt.f32 %v47_v10  ;;  %vm54_vm1 = vweird.f32 %v47_v10 }
  0xb4   :  { %v147_v15 = vpop.eup %146 }
  0xb5   :  { %v49_v16 = vmul.f32 %v147_v15, %v47_v10  ;;  %vm55_vm2 = vweird.f32 %v147_v15 }
  0xb6   :  { %vm267_vm4 = vmor %vm54_vm1, %vm55_vm2 }
  0xb7   :  { %v50_v22 = vmul.f32 %v147_v15, %v49_v16 }
  0xb9   :  { %v51_v27 = vmul.f32 0.5, %v50_v22 }
  0xbb   :  { %v52_v32 = vsub.f32 1.5, %v51_v27 }
  0xbd   :  { %v53_v37 = vmul.f32 %v147_v15, %v52_v32 }
  0xbf   :  { %v57_v43 = vsel %vm267_vm4, %v147_v15, %v53_v37 }
  0xf5   :  { %v64_v11 = vpop.xlane.xlu2 %63  ;;  %v98_v12 = vpop.xlane.xlu0 %97 }
  0xf6   :  { %v65_v13 = vmul.f32 0.03125, %v64_v11  ;;  %v99_v14 = vmul.f32 0.03125, %v98_v12 }
  0xf8   :  { %148 = vrsqrt.f32 %v65_v13  ;;  %vm72_vm5 = vweird.f32 %v65_v13  ;;  %vm106_vm8 = vweird.f32 %v99_v14 }
  0xf9   :  { %150 = vrsqrt.f32 %v99_v14 }
  0xfd   :  { %v81_v17 = vpop.xlane.xlu2 %80 }
  0xfe   :  { %v149_v18 = vpop.eup %148  ;;  %v82_v19 = vmul.f32 0.03125, %v81_v17 }
  0xff   :  { %v151_v20 = vpop.eup %150  ;;  %v67_v21 = vmul.f32 %v149_v18, %v65_v13  ;;  %vm73_vm3 = vweird.f32 %v149_v18 }
 0x100   :  { %v101_v23 = vmul.f32 %v151_v20, %v99_v14  ;;  %152 = vrsqrt.f32 %v82_v19  ;;  %vm74_vm6 = vmor %vm72_vm5, %vm73_vm3  ;;  %vm107_vm9 = vweird.f32 %v151_v20  ;;  %vm89_vm11 = vweird.f32 %v82_v19 }
 0x101   :  { %v68_v24 = vmul.f32 %v149_v18, %v67_v21  ;;  %vm108_vm14 = vmor %vm106_vm8, %vm107_vm9 }
 0x102   :  { %v102_v25 = vmul.f32 %v151_v20, %v101_v23 }
 0x103   :  { %v69_v26 = vmul.f32 0.5, %v68_v24 }
 0x104   :  { %v103_v30 = vmul.f32 0.5, %v102_v25 }
 0x105   :  { %v70_v29 = vsub.f32 1.5, %v69_v26 }
 0x106   :  { %v153_v28 = vpop.eup %152  ;;  %v104_v35 = vsub.f32 1.5, %v103_v30 }
 0x107   :  { %v84_v31 = vmul.f32 %v153_v28, %v82_v19  ;;  %v71_v34 = vmul.f32 %v149_v18, %v70_v29  ;;  %vm90_vm7 = vweird.f32 %v153_v28 }
 0x108   :  { %v105_v41 = vmul.f32 %v151_v20, %v104_v35  ;;  %vm91_vm12 = vmor %vm89_vm11, %vm90_vm7 }
 0x109   :  { %v85_v33 = vmul.f32 %v153_v28, %v84_v31  ;;  %v75_v40 = vsel %vm74_vm6, %v149_v18, %v71_v34 }
 0x10a   :  { %v110_v44 = vsel %vm43_vm0, %v57_v43, %v75_v40  ;;  %v109_v46 = vsel %vm108_vm14, %v151_v20, %v105_v41 }
 0x10b   :  { %v86_v36 = vmul.f32 0.5, %v85_v33 }
 0x10d   :  { %v87_v39 = vsub.f32 1.5, %v86_v36 }
 0x10f   :  { %v88_v42 = vmul.f32 %v153_v28, %v87_v39 }
 0x111   :  { %v92_v45 = vsel %vm91_vm12, %v153_v28, %v88_v42 }
 0x112   :  { %v112_v47 = vsel %vm111_vm10, %v110_v44, %v92_v45 }
 0x113   :  { %v114_v49 = vsel %vm113_vm13, %v112_v47, %v109_v46 }
 0x114   :  { %v115_v50 = vmul.f32 %v114_v49, %v259_v0 }
 0x116   :  { %v119_v51 = vmul.f32 %v145_v48, %v115_v50 }
 0x118   :  { %120 = vst [vmem:[#allocation7] sm:$0xff] %v119_v51 }
 0x119   :  { %131 = dma.vmem_to_hbm [thread:$0]  %s127_s21, 128, %s129_s24, [#allocation4]  }
 0x11a   :  { %230 = dma.done.wait [#allocation4], 128  }
 0x11b   :  { %231 = vsyncadd [#allocation4], 4294967168 }
 0x11c   :  { %136 = vsyncpa [#allocation3], 1 }
 0x11d   :  { %137 = vsyncpa [#allocation6], 1 }
 0x11e   :  { %138 = vsyncpa [#allocation4], 1 }

</bundles_post_ra>
